<compile_context>
chip_gen: v7x
topology: tpu7x:2x2x1
jax: 0.10.0
libtpu: 0.0.40
codegen_flags: <defaults>
</compile_context>

<pallas_src>
import functools

import jax
import jax.numpy as jnp
from jax import lax
from jax.experimental import pallas as pl
from jax.experimental.pallas import tpu as pltpu

EPS = 1e-5
NEG_SLOPE = 0.1
LANE = 128


def _leaky_relu(x):
    return jnp.where(x >= 0, x, NEG_SLOPE * x)


# ---------------------------------------------------------------------------
# Kernel
# ---------------------------------------------------------------------------
def basic_block_kernel(x_ref, bands1_ref, bands2_ref, g1_ref, b1_ref,
                       g2_ref, b2_ref, fold_ref, out_ref, *,
                       spatial_w, matmul_dtype):
    """Whole BasicBlock forward in the lane-dense packed layout.

    x_ref       : (N, H, W*C) f32   packed NHWC input (lane = w*C + c); residual
    bands*_ref  : (3, W*C, W*C)     block-banded conv weights (one per ky tap),
                                    pre-cast to matmul_dtype in the wrapper
    g*/b*_ref   : (1, W*C) f32      gamma / beta pre-tiled to the packed layout
    fold_ref    : (W*C, W*C) f32    fold[w*C+c, w'*C+c'] = (c == c'): folds the
                                    W groups per channel and broadcasts back
    out_ref     : (N, H, W*C) f32   packed output
    """
    N, H, WC = x_ref.shape
    M = N * H
    inv_count = 1.0 / (M * spatial_w)          # 1 / (N*H*W) per-channel count

    x2d = x_ref[...].reshape(M, WC)            # leading-dim merge only: free
    fold_m = fold_ref[...]
    zrow = jnp.zeros((N, 1, WC), jnp.float32)

    def conv3x3(lhs_2d, bands_ref):
        # Three MXU-native (M,128)x(128,128) matmuls; kx taps + ci->co folded
        # into the banded weights, ky handled by +/-1 row shifts below.
        lhs = lhs_2d.astype(matmul_dtype)
        z0 = jnp.dot(lhs, bands_ref[0], preferred_element_type=jnp.float32)
        z1 = jnp.dot(lhs, bands_ref[1], preferred_element_type=jnp.float32)
        z2 = jnp.dot(lhs, bands_ref[2], preferred_element_type=jnp.float32)
        z0_3 = z0.reshape(N, H, WC)
        z2_3 = z2.reshape(N, H, WC)
        # Row shifts within each image; the inserted zero rows implement the
        # H-direction zero padding of the convolution.
        up = jnp.concatenate([zrow, z0_3[:, :H - 1, :]], axis=1)   # h <- h-1
        dn = jnp.concatenate([z2_3[:, 1:, :], zrow], axis=1)       # h <- h+1
        return z1 + (up + dn).reshape(M, WC)

    def batchnorm(acc, gamma_p, beta_p):
        # Two-pass batch statistics in f32 (mean, then centered variance) to
        # avoid E[x^2]-E[x]^2 cancellation.  Each pass: one cross-sublane row
        # reduce + one tiny (1,WC)x(WC,WC) f32 matmul that folds the W groups
        # per channel and broadcasts the result back to the packed layout.
        s_row = jnp.sum(acc, axis=0, keepdims=True)                  # (1, WC)
        mean = jnp.dot(s_row, fold_m,
                       preferred_element_type=jnp.float32) * inv_count
        centered = acc - mean
        ss_row = jnp.sum(centered * centered, axis=0, keepdims=True)  # (1, WC)
        var = jnp.dot(ss_row, fold_m,
                      preferred_element_type=jnp.float32) * inv_count
        scale = gamma_p * lax.rsqrt(var + EPS)
        return centered * scale + beta_p

    # conv1 -> bn1 -> LeakyReLU (act1 stays in the packed lane-dense layout)
    act1 = _leaky_relu(batchnorm(conv3x3(x2d, bands1_ref),
                                 g1_ref[...], b1_ref[...]))
    # conv2 -> bn2 -> residual add -> LeakyReLU
    out = batchnorm(conv3x3(act1, bands2_ref), g2_ref[...], b2_ref[...])
    out = _leaky_relu(out + x2d)

    out_ref[...] = out.reshape(N, H, WC)       # leading-dim split only: free


# ---------------------------------------------------------------------------
# Wrapper-side weight / parameter packing
# ---------------------------------------------------------------------------
def _banded_conv_weights(w_hwio, spatial_w):
    """(3,3,Cin,Cout) HWIO weights -> (3, W*Cin, W*Cout) block-banded matrices.

    bands[ky, w_in*Cin + ci, w_out*Cout + co] = w[ky, w_in - w_out + 1, ci, co]
    when |w_in - w_out| <= 1, else 0 (this also implements the W-direction
    zero padding).
    """
    kh, kw, cin, cout = w_hwio.shape
    w_in = jnp.arange(spatial_w)[:, None]
    w_out = jnp.arange(spatial_w)[None, :]
    kx = w_in - w_out + 1                                   # (W, W)
    valid = (kx >= 0) & (kx <= kw - 1)
    kx = jnp.clip(kx, 0, kw - 1)
    g = w_hwio[:, kx]                                       # (3, W, W, Cin, Cout)
    g = g * valid[None, :, :, None, None].astype(w_hwio.dtype)
    g = g.transpose(0, 1, 3, 2, 4)                          # (3, W, Cin, W, Cout)
    return g.reshape(kh, spatial_w * cin, spatial_w * cout)


def _padded_bytes(shape, dtype):
    """Physical VMEM bytes including (sublane, 128)-tile padding."""
    itemsize = jnp.dtype(dtype).itemsize
    sub = {4: 8, 2: 16, 1: 32}[itemsize]
    if len(shape) == 1:
        shape = (1, shape[0])
    *lead, s, l = shape
    rows = -(-s // sub) * sub
    lanes = -(-l // LANE) * LANE
    n_lead = 1
    for d in lead:
        n_lead *= d
    return n_lead * rows * lanes * itemsize


def basic_block(x_nchw, w1, g1, b1, w2, g2, b2, *, matmul_dtype=jnp.bfloat16):
    """BasicBlock forward (stride=1, downsample=None -> in_planes == out_planes)."""
    x = jnp.transpose(x_nchw, (0, 2, 3, 1)).astype(jnp.float32)  # NCHW -> NHWC
    N, H, W, Cin = x.shape
    Cout = w1.shape[-1]
    assert w1.shape == (3, 3, Cin, Cout) and w2.shape == (3, 3, Cout, Cout)
    assert Cin == Cout, (
        "residual add requires in_planes == out_planes "
        "(stride=1 / no-downsample BasicBlock)")
    C = Cout
    WC = W * C
    assert WC % LANE == 0, "lane-dense packing requires W*C % 128 == 0"

    x_packed = x.reshape(N, H, WC)

    # Block-banded conv weights, pre-cast to the matmul dtype in the wrapper
    # (no in-kernel weight casts, halved weight DMA/VMEM bytes for bf16).
    bands1 = _banded_conv_weights(w1.astype(jnp.float32), W).astype(matmul_dtype)
    bands2 = _banded_conv_weights(w2.astype(jnp.float32), W).astype(matmul_dtype)

    # BN params pre-tiled into the packed (w, c) lane layout.
    g1p = jnp.tile(g1.astype(jnp.float32), W).reshape(1, WC)
    b1p = jnp.tile(b1.astype(jnp.float32), W).reshape(1, WC)
    g2p = jnp.tile(g2.astype(jnp.float32), W).reshape(1, WC)
    b2p = jnp.tile(b2.astype(jnp.float32), W).reshape(1, WC)

    # Per-channel fold + broadcast matrix for the BN statistics matmuls.
    fold = jnp.tile(jnp.eye(C, dtype=jnp.float32), (W, W))          # (WC, WC)

    # ---- VMEM footprint (tile-padded) / limits / cost ----
    M = N * H
    footprint = (
        2 * _padded_bytes((N, H, WC), jnp.float32)            # x + out
        + 2 * _padded_bytes((3, WC, WC), matmul_dtype)        # banded weights
        + _padded_bytes((WC, WC), jnp.float32)                # fold matrix
        + 4 * _padded_bytes((1, WC), jnp.float32)             # bn params
        + 12 * _padded_bytes((M, WC), jnp.float32))           # live temporaries
    assert footprint < 32 * 1024 * 1024, (
        "monolithic BasicBlock kernel would not fit comfortably in per-core "
        "VMEM; use a tiled multi-pass variant for this shape")
    try:
        vmem_cap = int(pltpu.get_tpu_info().vmem_capacity_bytes)
    except Exception:
        vmem_cap = 64 * 1024 * 1024        # conservative v7x floor
    vmem_limit = int(min(vmem_cap, 64 * 1024 * 1024,
                         max(4 * footprint, 16 * 1024 * 1024)))

    wbytes = jnp.dtype(matmul_dtype).itemsize
    cost = pl.CostEstimate(
        flops=2 * 3 * 2 * M * WC * WC + 2 * 2 * 2 * WC * WC,
        transcendentals=2 * WC,
        bytes_accessed=(2 * 4 * M * WC            # x + out
                        + 2 * wbytes * 3 * WC * WC  # banded weights
                        + 4 * WC * WC               # fold
                        + 4 * 4 * WC))              # bn params

    kernel = functools.partial(basic_block_kernel, spatial_w=W,
                               matmul_dtype=matmul_dtype)

    out_packed = pl.pallas_call(
        kernel,
        out_shape=jax.ShapeDtypeStruct((N, H, WC), jnp.float32),
        in_specs=[pl.BlockSpec(memory_space=pltpu.MemorySpace.VMEM)] * 8,
        out_specs=pl.BlockSpec(memory_space=pltpu.MemorySpace.VMEM),
        compiler_params=pltpu.CompilerParams(vmem_limit_bytes=vmem_limit),
        cost_estimate=cost,
    )(x_packed, bands1, bands2, g1p, b1p, g2p, b2p, fold)

    out_nhwc = out_packed.reshape(N, H, W, C)
    return jnp.transpose(out_nhwc, (0, 3, 1, 2))  # NHWC -> NCHW


# ---------------------------------------------------------------------------
# Pure-JAX reference (matches PyTorch semantics)
# ---------------------------------------------------------------------------
def ref_basic_block(x_nchw, w1, g1, b1, w2, g2, b2):
    x = jnp.transpose(x_nchw, (0, 2, 3, 1)).astype(jnp.float32)

    def conv(v, w):
        return lax.conv_general_dilated(
            v, w, window_strides=(1, 1), padding="SAME",
            dimension_numbers=("NHWC", "HWIO", "NHWC"),
            precision=lax.Precision.HIGHEST)

    def bn(v, g, b):
        mu = jnp.mean(v, axis=(0, 1, 2), keepdims=True)
        var = jnp.mean((v - mu) ** 2, axis=(0, 1, 2), keepdims=True)
        return (v - mu) * lax.rsqrt(var + EPS) * g + b

    o = _leaky_relu(bn(conv(x, w1), g1, b1))
    o = bn(conv(o, w2), g2, b2)
    o = _leaky_relu(o + x)
    return jnp.transpose(o, (0, 3, 1, 2))


if __name__ == "__main__":
    # Small shapes consistent with the module (in_planes == out_planes, stride=1).
    # C=8, W=16 -> W*C = 128: the packed layout is exactly one full lane-width.
    N, C, H, W = 2, 8, 16, 16
    key = jax.random.PRNGKey(0)
    kx_, kw1, kw2, kg1, kb1, kg2, kb2 = jax.random.split(key, 7)

    x = jax.random.normal(kx_, (N, C, H, W), jnp.float32)          # NCHW
    w1 = jax.random.normal(kw1, (3, 3, C, C), jnp.float32) * 0.1   # HWIO
    w2 = jax.random.normal(kw2, (3, 3, C, C), jnp.float32) * 0.1   # HWIO
    g1 = 1.0 + 0.1 * jax.random.normal(kg1, (C,), jnp.float32)
    b1 = 0.1 * jax.random.normal(kb1, (C,), jnp.float32)
    g2 = 1.0 + 0.1 * jax.random.normal(kg2, (C,), jnp.float32)
    b2 = 0.1 * jax.random.normal(kb2, (C,), jnp.float32)

    ref = jax.block_until_ready(ref_basic_block(x, w1, g1, b1, w2, g2, b2))

    # Exact-semantics path: f32 matmul operands, tight tolerance.
    out_f32 = jax.block_until_ready(
        basic_block(x, w1, g1, b1, w2, g2, b2, matmul_dtype=jnp.float32))
    assert out_f32.shape == (N, C, H, W)
    err32 = float(jnp.max(jnp.abs(out_f32 - ref)))
    assert jnp.allclose(out_f32, ref, rtol=1e-3, atol=1e-3), f"f32 err={err32}"

    # Default fast path: bf16 matmul operands (MXU-native on v5e/v6e/v7x),
    # f32 accumulation and f32 BN / elementwise math.
    out_bf16 = jax.block_until_ready(basic_block(x, w1, g1, b1, w2, g2, b2))
    err16 = float(jnp.max(jnp.abs(out_bf16 - ref)))
    assert jnp.allclose(out_bf16, ref, rtol=2e-2, atol=2e-2), f"bf16 err={err16}"

    print("KERNEL_OK")
</pallas_src>

<mosaic_0001>
module attributes {stable_mosaic.version = 11 : i64} {
  func.func @basic_block_kernel(%arg0: memref<2x16x128xf32, #tpu.memory_space<vmem>>, %arg1: memref<3x128x128xf32, #tpu.memory_space<vmem>>, %arg2: memref<3x128x128xf32, #tpu.memory_space<vmem>>, %arg3: memref<1x128xf32, #tpu.memory_space<vmem>>, %arg4: memref<1x128xf32, #tpu.memory_space<vmem>>, %arg5: memref<1x128xf32, #tpu.memory_space<vmem>>, %arg6: memref<1x128xf32, #tpu.memory_space<vmem>>, %arg7: memref<128x128xf32, #tpu.memory_space<vmem>>, %arg8: memref<2x16x128xf32, #tpu.memory_space<vmem>>) attributes {dimension_semantics = [], scalar_prefetch = 0 : i64, scratch_operands = 0 : i64, tpu.core_type = #tpu.core_type<tc>} {
    %c0 = arith.constant 0 : index
    %c0_0 = arith.constant 0 : index
    %c0_1 = arith.constant 0 : index
    %0 = vector.load %arg0[%c0, %c0_0, %c0_1] : memref<2x16x128xf32, #tpu.memory_space<vmem>>, vector<2x16x128xf32>
    %1 = vector.shape_cast %0 : vector<2x16x128xf32> to vector<32x128xf32>
    %c0_2 = arith.constant 0 : index
    %c0_3 = arith.constant 0 : index
    %2 = vector.load %arg7[%c0_2, %c0_3] : memref<128x128xf32, #tpu.memory_space<vmem>>, vector<128x128xf32>
    %cst = arith.constant 0.000000e+00 : f32
    %3 = vector.broadcast %cst : f32 to vector<2x1x128xf32>
    %c0_4 = arith.constant 0 : index
    %c0_5 = arith.constant 0 : index
    %c0_6 = arith.constant 0 : index
    %4 = vector.load %arg1[%c0_4, %c0_5, %c0_6] : memref<3x128x128xf32, #tpu.memory_space<vmem>>, vector<1x128x128xf32>
    %5 = vector.shape_cast %4 : vector<1x128x128xf32> to vector<128x128xf32>
    %cst_7 = arith.constant dense<0.000000e+00> : vector<32x128xf32>
    %6 = tpu.matmul %1, %5, %cst_7 {dimension_numbers = #tpu.dot_dimension_numbers<[1], [0], [0], [1], [0, 0, 1, 1], [], []>} : vector<32x128xf32>, vector<128x128xf32>, vector<32x128xf32> -> vector<32x128xf32>
    %c1 = arith.constant 1 : index
    %c0_8 = arith.constant 0 : index
    %c0_9 = arith.constant 0 : index
    %7 = vector.load %arg1[%c1, %c0_8, %c0_9] : memref<3x128x128xf32, #tpu.memory_space<vmem>>, vector<1x128x128xf32>
    %8 = vector.shape_cast %7 : vector<1x128x128xf32> to vector<128x128xf32>
    %cst_10 = arith.constant dense<0.000000e+00> : vector<32x128xf32>
    %9 = tpu.matmul %1, %8, %cst_10 {dimension_numbers = #tpu.dot_dimension_numbers<[1], [0], [0], [1], [0, 0, 1, 1], [], []>} : vector<32x128xf32>, vector<128x128xf32>, vector<32x128xf32> -> vector<32x128xf32>
    %c2 = arith.constant 2 : index
    %c0_11 = arith.constant 0 : index
    %c0_12 = arith.constant 0 : index
    %10 = vector.load %arg1[%c2, %c0_11, %c0_12] : memref<3x128x128xf32, #tpu.memory_space<vmem>>, vector<1x128x128xf32>
    %11 = vector.shape_cast %10 : vector<1x128x128xf32> to vector<128x128xf32>
    %cst_13 = arith.constant dense<0.000000e+00> : vector<32x128xf32>
    %12 = tpu.matmul %1, %11, %cst_13 {dimension_numbers = #tpu.dot_dimension_numbers<[1], [0], [0], [1], [0, 0, 1, 1], [], []>} : vector<32x128xf32>, vector<128x128xf32>, vector<32x128xf32> -> vector<32x128xf32>
    %13 = vector.shape_cast %6 : vector<32x128xf32> to vector<2x16x128xf32>
    %14 = vector.shape_cast %12 : vector<32x128xf32> to vector<2x16x128xf32>
    %15 = vector.extract_strided_slice %13 {offsets = [0, 0, 0], sizes = [2, 15, 128], strides = [1, 1, 1]} : vector<2x16x128xf32> to vector<2x15x128xf32>
    %16 = tpu.concatenate %3, %15 in 1 : vector<2x1x128xf32>, vector<2x15x128xf32> -> vector<2x16x128xf32>
    %17 = vector.extract_strided_slice %14 {offsets = [0, 1, 0], sizes = [2, 15, 128], strides = [1, 1, 1]} : vector<2x16x128xf32> to vector<2x15x128xf32>
    %18 = tpu.concatenate %17, %3 in 1 : vector<2x15x128xf32>, vector<2x1x128xf32> -> vector<2x16x128xf32>
    %19 = arith.addf %16, %18 : vector<2x16x128xf32>
    %20 = vector.shape_cast %19 : vector<2x16x128xf32> to vector<32x128xf32>
    %21 = arith.addf %9, %20 : vector<32x128xf32>
    %c0_14 = arith.constant 0 : index
    %c0_15 = arith.constant 0 : index
    %22 = vector.load %arg3[%c0_14, %c0_15] : memref<1x128xf32, #tpu.memory_space<vmem>>, vector<1x128xf32>
    %c0_16 = arith.constant 0 : index
    %c0_17 = arith.constant 0 : index
    %23 = vector.load %arg4[%c0_16, %c0_17] : memref<1x128xf32, #tpu.memory_space<vmem>>, vector<1x128xf32>
    %cst_18 = arith.constant dense<0.000000e+00> : vector<128xf32>
    %24 = vector.multi_reduction <add>, %21, %cst_18 [0] : vector<32x128xf32> to vector<128xf32>
    %25 = vector.shape_cast %24 : vector<128xf32> to vector<1x128xf32>
    %cst_19 = arith.constant dense<0.000000e+00> : vector<1x128xf32>
    %26 = tpu.matmul %25, %2, %cst_19 {dimension_numbers = #tpu.dot_dimension_numbers<[1], [0], [0], [1], [0, 0, 1, 1], [], []>} : vector<1x128xf32>, vector<128x128xf32>, vector<1x128xf32> -> vector<1x128xf32>
    %cst_20 = arith.constant 0.001953125 : f32
    %27 = vector.broadcast %cst_20 : f32 to vector<1x128xf32>
    %28 = arith.mulf %26, %27 : vector<1x128xf32>
    %29 = vector.broadcast %28 : vector<1x128xf32> to vector<32x128xf32>
    %30 = arith.subf %21, %29 : vector<32x128xf32>
    %31 = arith.mulf %30, %30 : vector<32x128xf32>
    %cst_21 = arith.constant dense<0.000000e+00> : vector<128xf32>
    %32 = vector.multi_reduction <add>, %31, %cst_21 [0] : vector<32x128xf32> to vector<128xf32>
    %33 = vector.shape_cast %32 : vector<128xf32> to vector<1x128xf32>
    %cst_22 = arith.constant dense<0.000000e+00> : vector<1x128xf32>
    %34 = tpu.matmul %33, %2, %cst_22 {dimension_numbers = #tpu.dot_dimension_numbers<[1], [0], [0], [1], [0, 0, 1, 1], [], []>} : vector<1x128xf32>, vector<128x128xf32>, vector<1x128xf32> -> vector<1x128xf32>
    %cst_23 = arith.constant 0.001953125 : f32
    %35 = vector.broadcast %cst_23 : f32 to vector<1x128xf32>
    %36 = arith.mulf %34, %35 : vector<1x128xf32>
    %cst_24 = arith.constant 9.99999974E-6 : f32
    %37 = vector.broadcast %cst_24 : f32 to vector<1x128xf32>
    %38 = arith.addf %36, %37 : vector<1x128xf32>
    %39 = math.rsqrt %38 : vector<1x128xf32>
    %40 = arith.mulf %22, %39 : vector<1x128xf32>
    %41 = vector.broadcast %40 : vector<1x128xf32> to vector<32x128xf32>
    %42 = arith.mulf %30, %41 : vector<32x128xf32>
    %43 = vector.broadcast %23 : vector<1x128xf32> to vector<32x128xf32>
    %44 = arith.addf %42, %43 : vector<32x128xf32>
    %cst_25 = arith.constant 0.000000e+00 : f32
    %45 = vector.broadcast %cst_25 : f32 to vector<32x128xf32>
    %46 = arith.cmpf oge, %44, %45 : vector<32x128xf32>
    %cst_26 = arith.constant 1.000000e-01 : f32
    %47 = vector.broadcast %cst_26 : f32 to vector<32x128xf32>
    %48 = arith.mulf %47, %44 : vector<32x128xf32>
    %49 = arith.select %46, %44, %48 : vector<32x128xi1>, vector<32x128xf32>
    %c0_27 = arith.constant 0 : index
    %c0_28 = arith.constant 0 : index
    %c0_29 = arith.constant 0 : index
    %50 = vector.load %arg2[%c0_27, %c0_28, %c0_29] : memref<3x128x128xf32, #tpu.memory_space<vmem>>, vector<1x128x128xf32>
    %51 = vector.shape_cast %50 : vector<1x128x128xf32> to vector<128x128xf32>
    %cst_30 = arith.constant dense<0.000000e+00> : vector<32x128xf32>
    %52 = tpu.matmul %49, %51, %cst_30 {dimension_numbers = #tpu.dot_dimension_numbers<[1], [0], [0], [1], [0, 0, 1, 1], [], []>} : vector<32x128xf32>, vector<128x128xf32>, vector<32x128xf32> -> vector<32x128xf32>
    %c1_31 = arith.constant 1 : index
    %c0_32 = arith.constant 0 : index
    %c0_33 = arith.constant 0 : index
    %53 = vector.load %arg2[%c1_31, %c0_32, %c0_33] : memref<3x128x128xf32, #tpu.memory_space<vmem>>, vector<1x128x128xf32>
    %54 = vector.shape_cast %53 : vector<1x128x128xf32> to vector<128x128xf32>
    %cst_34 = arith.constant dense<0.000000e+00> : vector<32x128xf32>
    %55 = tpu.matmul %49, %54, %cst_34 {dimension_numbers = #tpu.dot_dimension_numbers<[1], [0], [0], [1], [0, 0, 1, 1], [], []>} : vector<32x128xf32>, vector<128x128xf32>, vector<32x128xf32> -> vector<32x128xf32>
    %c2_35 = arith.constant 2 : index
    %c0_36 = arith.constant 0 : index
    %c0_37 = arith.constant 0 : index
    %56 = vector.load %arg2[%c2_35, %c0_36, %c0_37] : memref<3x128x128xf32, #tpu.memory_space<vmem>>, vector<1x128x128xf32>
    %57 = vector.shape_cast %56 : vector<1x128x128xf32> to vector<128x128xf32>
    %cst_38 = arith.constant dense<0.000000e+00> : vector<32x128xf32>
    %58 = tpu.matmul %49, %57, %cst_38 {dimension_numbers = #tpu.dot_dimension_numbers<[1], [0], [0], [1], [0, 0, 1, 1], [], []>} : vector<32x128xf32>, vector<128x128xf32>, vector<32x128xf32> -> vector<32x128xf32>
    %59 = vector.shape_cast %52 : vector<32x128xf32> to vector<2x16x128xf32>
    %60 = vector.shape_cast %58 : vector<32x128xf32> to vector<2x16x128xf32>
    %61 = vector.extract_strided_slice %59 {offsets = [0, 0, 0], sizes = [2, 15, 128], strides = [1, 1, 1]} : vector<2x16x128xf32> to vector<2x15x128xf32>
    %62 = tpu.concatenate %3, %61 in 1 : vector<2x1x128xf32>, vector<2x15x128xf32> -> vector<2x16x128xf32>
    %63 = vector.extract_strided_slice %60 {offsets = [0, 1, 0], sizes = [2, 15, 128], strides = [1, 1, 1]} : vector<2x16x128xf32> to vector<2x15x128xf32>
    %64 = tpu.concatenate %63, %3 in 1 : vector<2x15x128xf32>, vector<2x1x128xf32> -> vector<2x16x128xf32>
    %65 = arith.addf %62, %64 : vector<2x16x128xf32>
    %66 = vector.shape_cast %65 : vector<2x16x128xf32> to vector<32x128xf32>
    %67 = arith.addf %55, %66 : vector<32x128xf32>
    %c0_39 = arith.constant 0 : index
    %c0_40 = arith.constant 0 : index
    %68 = vector.load %arg5[%c0_39, %c0_40] : memref<1x128xf32, #tpu.memory_space<vmem>>, vector<1x128xf32>
    %c0_41 = arith.constant 0 : index
    %c0_42 = arith.constant 0 : index
    %69 = vector.load %arg6[%c0_41, %c0_42] : memref<1x128xf32, #tpu.memory_space<vmem>>, vector<1x128xf32>
    %cst_43 = arith.constant dense<0.000000e+00> : vector<128xf32>
    %70 = vector.multi_reduction <add>, %67, %cst_43 [0] : vector<32x128xf32> to vector<128xf32>
    %71 = vector.shape_cast %70 : vector<128xf32> to vector<1x128xf32>
    %cst_44 = arith.constant dense<0.000000e+00> : vector<1x128xf32>
    %72 = tpu.matmul %71, %2, %cst_44 {dimension_numbers = #tpu.dot_dimension_numbers<[1], [0], [0], [1], [0, 0, 1, 1], [], []>} : vector<1x128xf32>, vector<128x128xf32>, vector<1x128xf32> -> vector<1x128xf32>
    %cst_45 = arith.constant 0.001953125 : f32
    %73 = vector.broadcast %cst_45 : f32 to vector<1x128xf32>
    %74 = arith.mulf %72, %73 : vector<1x128xf32>
    %75 = vector.broadcast %74 : vector<1x128xf32> to vector<32x128xf32>
    %76 = arith.subf %67, %75 : vector<32x128xf32>
    %77 = arith.mulf %76, %76 : vector<32x128xf32>
    %cst_46 = arith.constant dense<0.000000e+00> : vector<128xf32>
    %78 = vector.multi_reduction <add>, %77, %cst_46 [0] : vector<32x128xf32> to vector<128xf32>
    %79 = vector.shape_cast %78 : vector<128xf32> to vector<1x128xf32>
    %cst_47 = arith.constant dense<0.000000e+00> : vector<1x128xf32>
    %80 = tpu.matmul %79, %2, %cst_47 {dimension_numbers = #tpu.dot_dimension_numbers<[1], [0], [0], [1], [0, 0, 1, 1], [], []>} : vector<1x128xf32>, vector<128x128xf32>, vector<1x128xf32> -> vector<1x128xf32>
    %cst_48 = arith.constant 0.001953125 : f32
    %81 = vector.broadcast %cst_48 : f32 to vector<1x128xf32>
    %82 = arith.mulf %80, %81 : vector<1x128xf32>
    %cst_49 = arith.constant 9.99999974E-6 : f32
    %83 = vector.broadcast %cst_49 : f32 to vector<1x128xf32>
    %84 = arith.addf %82, %83 : vector<1x128xf32>
    %85 = math.rsqrt %84 : vector<1x128xf32>
    %86 = arith.mulf %68, %85 : vector<1x128xf32>
    %87 = vector.broadcast %86 : vector<1x128xf32> to vector<32x128xf32>
    %88 = arith.mulf %76, %87 : vector<32x128xf32>
    %89 = vector.broadcast %69 : vector<1x128xf32> to vector<32x128xf32>
    %90 = arith.addf %88, %89 : vector<32x128xf32>
    %91 = arith.addf %90, %1 : vector<32x128xf32>
    %cst_50 = arith.constant 0.000000e+00 : f32
    %92 = vector.broadcast %cst_50 : f32 to vector<32x128xf32>
    %93 = arith.cmpf oge, %91, %92 : vector<32x128xf32>
    %cst_51 = arith.constant 1.000000e-01 : f32
    %94 = vector.broadcast %cst_51 : f32 to vector<32x128xf32>
    %95 = arith.mulf %94, %91 : vector<32x128xf32>
    %96 = arith.select %93, %91, %95 : vector<32x128xi1>, vector<32x128xf32>
    %97 = vector.shape_cast %96 : vector<32x128xf32> to vector<2x16x128xf32>
    %c0_52 = arith.constant 0 : index
    %c0_53 = arith.constant 0 : index
    %c0_54 = arith.constant 0 : index
    %98 = vector.load %arg8[%c0_52, %c0_53, %c0_54] : memref<2x16x128xf32, #tpu.memory_space<vmem>>, vector<2x16x128xf32>
    tpu.vector_store %arg8[%c0_52, %c0_53, %c0_54], %97 {strides = array<i32>} : memref<2x16x128xf32, #tpu.memory_space<vmem>>, vector<2x16x128xf32>,
    return
  }
}

</mosaic_0001>

<bundles_post_ra>
// kernel: tpu_custom_call.1
= control target key start
LH: loop header
LB: loop body
LE: loop exit
PB: predicated region body
PF: predicated region fallthrough
CT: control target
= control target key end

     0   :  { %13 = vsyncpa [#allocation3], 0  ;;  %s2527_s0 = inlined_call_operand.hbm [shape: f32[2,16,128], index: 0, kind: input, shape index: {}]   ;;  %s2528_s1 = inlined_call_operand.hbm [shape: f32[3,128,128], index: 1, kind: input, shape index: {}]   ;;  %s2529_s2 = inlined_call_operand.hbm [shape: f32[3,128,128], index: 2, kind: input, shape index: {}]   ;;  %s2530_s3 = inlined_call_operand.vmem [shape: f32[1,128], index: 3, kind: input, shape index: {}]   ;;  %s2531_s4 = inlined_call_operand.vmem [shape: f32[1,128], index: 4, kind: input, shape index: {}]   ;;  %s2532_s5 = inlined_call_operand.vmem [shape: f32[1,128], index: 5, kind: input, shape index: {}]   ;;  %s2533_s6 = inlined_call_operand.vmem [shape: f32[1,128], index: 6, kind: input, shape index: {}]   ;;  %s2534_s7 = inlined_call_operand.hbm [shape: f32[128,128], index: 7, kind: input, shape index: {}]   ;;  %s2535_s8 = inlined_call_operand.hbm [shape: f32[2,16,128], index: 8, kind: output, shape index: {}]  }
   0x1   :  { %14 = vsyncpa [#allocation6], 0 }
   0x2   :  { %15 = vsyncpa [#allocation9], 0 }
   0x3   :  { %16 = vsyncpa [#allocation4], 0  ;;  %s2213_s27 = smov [#allocation5]   ;;  %s2214_s29 = smov [#allocation2]  }
   0x4   :  { %s34_s28 = sshll.u32 %s2213_s27, 4  ;;  %s22_s30 = sshll.u32 %s2214_s29, 4  ;;  %s35_s28 = int_to_ptr.vmem [resolvable:$true] %s34_s28  ;;  %s2268_s30 = int_to_ptr.vmem [resolvable:$true] %s22_s30 }
   0x5   :  { %s2095_s11 = scalar_lea.hbm %s2528_s1, 6144 }
   0x6   :  { %p2096_p0 = scmp.ne.s32.totalorder %s2528_s1, %s2095_s11  ;;  %p2099_p1 = scmp.lt.u32.totalorder %s2095_s11, %s2528_s1 }
   0x8   :  { %p2101_p2 = pnand %p2099_p1, %p2096_p0 }
   0xa   :  { %2104 = shalt.err (!%p2101_p2)
}
   0xb   :  { %s2105_s16 = scalar_lea.vmem %s35_s28, 6144  ;;  %p2110_p4 = scmp.lt.s32.totalorder %s35_s28, %s35_s28 }
   0xc   :  { %p2106_p3 = scmp.ne.s32.totalorder %s35_s28, %s2105_s16  ;;  %p2111_p5 = scmp.lt.s32.totalorder %s2105_s16, %s2105_s16 }
   0xe   :  { %p2112_p6 = por %p2111_p5, %p2110_p4 }
  0x10   :  { %p2113_p7 = pnand %p2112_p6, %p2106_p3 }
  0x12   :  { %2116 = shalt.err (!%p2113_p7)
}
  0x13   :  { %s2215_s17 = smov 128   ;;  %s2216_s18 = smov 8  }
  0x14   :  { %40 = dma.hbm_to_vmem [thread:$0]  %s2528_s1, 6144, %s35_s28, [#allocation6], %s2215_s17, %s2215_s17, %s2216_s18  }
  0x15   :  { %s2117_s23 = scalar_lea.hbm %s2527_s0, 512 }
  0x16   :  { %p2118_p8 = scmp.ne.s32.totalorder %s2527_s0, %s2117_s23  ;;  %p2121_p9 = scmp.lt.u32.totalorder %s2117_s23, %s2527_s0 }
  0x18   :  { %p2123_p10 = pnand %p2121_p9, %p2118_p8 }
  0x1a   :  { %2126 = shalt.err (!%p2123_p10)
}
  0x1b   :  { %s2127_s29 = scalar_lea.vmem %s2268_s30, 512  ;;  %p2132_p12 = scmp.lt.s32.totalorder %s2268_s30, %s2268_s30 }
  0x1c   :  { %p2128_p11 = scmp.ne.s32.totalorder %s2268_s30, %s2127_s29  ;;  %p2133_p13 = scmp.lt.s32.totalorder %s2127_s29, %s2127_s29 }
  0x1e   :  { %p2134_p0 = por %p2133_p13, %p2132_p12 }
  0x20   :  { %p2135_p1 = pnand %p2134_p0, %p2128_p11 }
  0x22   :  { %2138 = shalt.err (!%p2135_p1)
}
  0x23   :  { %28 = dma.hbm_to_vmem [thread:$0]  %s2527_s0, 512, %s2268_s30, [#allocation3], %s2215_s17, %s2215_s17, %s2216_s18  }
  0x24   :  { %s2217_s9 = smov [#allocation7]   ;;  %s2218_s11 = smov [#allocation8]  }
  0x25   :  { %s46_s10 = sshll.u32 %s2217_s9, 4  ;;  %s66_s12 = sshll.u32 %s2218_s11, 4  ;;  %s47_s10 = int_to_ptr.vmem [resolvable:$true] %s46_s10  ;;  %s2305_s12 = int_to_ptr.vmem [resolvable:$true] %s66_s12 }
  0x26   :  { %s2139_s15 = scalar_lea.hbm %s2529_s2, 6144 }
  0x27   :  { %p2140_p2 = scmp.ne.s32.totalorder %s2529_s2, %s2139_s15  ;;  %p2143_p3 = scmp.lt.u32.totalorder %s2139_s15, %s2529_s2 }
  0x29   :  { %p2145_p4 = pnand %p2143_p3, %p2140_p2 }
  0x2b   :  { %2148 = shalt.err (!%p2145_p4)
}
  0x2c   :  { %s2149_s0 = scalar_lea.vmem %s47_s10, 6144  ;;  %p2154_p6 = scmp.lt.s32.totalorder %s47_s10, %s47_s10 }
  0x2d   :  { %p2150_p5 = scmp.ne.s32.totalorder %s47_s10, %s2149_s0  ;;  %p2155_p7 = scmp.lt.s32.totalorder %s2149_s0, %s2149_s0 }
  0x2f   :  { %p2156_p8 = por %p2155_p7, %p2154_p6 }
  0x31   :  { %p2157_p9 = pnand %p2156_p8, %p2150_p5 }
  0x33   :  { %2160 = shalt.err (!%p2157_p9)
}
  0x34   :  { %52 = dma.hbm_to_vmem [thread:$0]  %s2529_s2, 6144, %s47_s10, [#allocation6], %s2215_s17, %s2215_s17, %s2216_s18  }
  0x35   :  { %s2161_s25 = scalar_lea.hbm %s2534_s7, 2048 }
  0x36   :  { %p2162_p10 = scmp.ne.s32.totalorder %s2534_s7, %s2161_s25  ;;  %p2165_p11 = scmp.lt.u32.totalorder %s2161_s25, %s2534_s7 }
  0x38   :  { %p2167_p12 = pnand %p2165_p11, %p2162_p10 }
  0x3a   :  { %2170 = shalt.err (!%p2167_p12)
}
  0x3b   :  { %s2171_s28 = scalar_lea.vmem %s2305_s12, 2048  ;;  %p2176_p0 = scmp.lt.s32.totalorder %s2305_s12, %s2305_s12 }
  0x3c   :  { %p2172_p13 = scmp.ne.s32.totalorder %s2305_s12, %s2171_s28  ;;  %p2177_p1 = scmp.lt.s32.totalorder %s2171_s28, %s2171_s28 }
  0x3e   :  { %p2178_p2 = por %p2177_p1, %p2176_p0 }
  0x40   :  { %p2179_p3 = pnand %p2178_p2, %p2172_p13 }
  0x42   :  { %2182 = shalt.err (!%p2179_p3)
}
  0x43   :  { %72 = dma.hbm_to_vmem [thread:$0]  %s2534_s7, 2048, %s2305_s12, [#allocation9], %s2215_s17, %s2215_s17, %s2216_s18  }
  0x44   :  { %2205 = dma.done.wait [#allocation3], 512  }
  0x45   :  { %2206 = vsyncadd [#allocation3], 4294966784 }
  0x46   :  { %2207 = dma.done.wait [#allocation6], 12288  }
  0x47   :  { %2208 = vsyncadd [#allocation6], 4294955008 }
  0x48   :  { %2209 = dma.done.wait [#allocation9], 2048  }
  0x49   :  { %2210 = vsyncadd [#allocation9], 4294965248  ;;  %v105_v0 = vld [vmem:[#allocation5] sm:$0xff]  ;;  %v106_v1 = vld [vmem:[#allocation5 + $0x8] sm:$0xff]  ;;  %vm2220_vm0 = vmmov 0   ;;  %vm346_vm1 = vcmask 1046528  }
  0x4a   :  { %v224_v2 = vld [vmem:[#allocation5 + $0x100] sm:$0xff]  ;;  %v1792_v3 = vpack.c.bf16 %v106_v1, %v105_v0  ;;  %v225_v4 = vld [vmem:[#allocation5 + $0x108] sm:$0xff]  ;;  %v107_v5 = vld [vmem:[#allocation5 + $0x10] sm:$0xff]  ;;  %vm329_vm2 = vcmask 1040384  }
  0x4b   :  { %v108_v6 = vld [vmem:[#allocation5 + $0x18] sm:$0xff]  ;;  %v1824_v7 = vpack.c.bf16 %v225_v4, %v224_v2  ;;  %v226_v9 = vld [vmem:[#allocation5 + $0x110] sm:$0xff]  ;;  %v109_v11 = vld [vmem:[#allocation5 + $0x20] sm:$0xff] }
  0x4c   :  { %v1796_v8 = vpack.c.bf16 %v108_v6, %v107_v5  ;;  %v227_v10 = vld [vmem:[#allocation5 + $0x118] sm:$0xff]  ;;  %1793 = vmatprep.subr.bf16.mxu0 %v1792_v3  ;;  %v110_v13 = vld [vmem:[#allocation5 + $0x28] sm:$0xff]  ;;  %v228_v14 = vld [vmem:[#allocation5 + $0x120] sm:$0xff] }
  0x4d   :  { %v1828_v12 = vpack.c.bf16 %v227_v10, %v226_v9  ;;  %v229_v15 = vld [vmem:[#allocation5 + $0x128] sm:$0xff]  ;;  %1825 = vmatprep.subr.bf16.mxu1 %v1824_v7  ;;  %1795 = vmatpush3.bf16.msra.mxu0 %v1792_v3  ;;  %v1800_v16 = vpack.c.bf16 %v110_v13, %v109_v11  ;;  %v111_v18 = vld [vmem:[#allocation5 + $0x30] sm:$0xff]  ;;  %v112_v19 = vld [vmem:[#allocation5 + $0x38] sm:$0xff] }
  0x4e   :  { %1827 = vmatpush3.bf16.msra.mxu1 %v1824_v7  ;;  %1797 = vmatprep.subr.bf16.mxu0 %v1796_v8  ;;  %v1832_v17 = vpack.c.bf16 %v229_v15, %v228_v14  ;;  %v230_v20 = vld [vmem:[#allocation5 + $0x130] sm:$0xff]  ;;  %v231_v21 = vld [vmem:[#allocation5 + $0x138] sm:$0xff]  ;;  %v1804_v22 = vpack.c.bf16 %v112_v19, %v111_v18  ;;  %v113_v24 = vld [vmem:[#allocation5 + $0x40] sm:$0xff]  ;;  %v2219_v14 = vmov 0.0|0.0  }
  0x4f   :  { %1829 = vmatprep.subr.bf16.mxu1 %v1828_v12  ;;  %v1836_v23 = vpack.c.bf16 %v231_v21, %v230_v20  ;;  %v114_v25 = vld [vmem:[#allocation5 + $0x48] sm:$0xff]  ;;  %v2342_v26 = vld [vmem:[#allocation2] sm:$0xff]  ;;  %v115_v31 = vld [vmem:[#allocation5 + $0x50] sm:$0xff] }
  0x50   :  { %v232_v27 = vld [vmem:[#allocation5 + $0x140] sm:$0xff]  ;;  %v233_v28 = vld [vmem:[#allocation5 + $0x148] sm:$0xff]  ;;  %1456 = vmatprep.mubr.f32.mxu0 %v2342_v26  ;;  %1494 = vmatprep.mubr.f32.mxu1 %v2342_v26  ;;  %v1808_v29 = vpack.c.bf16 %v114_v25, %v113_v24  ;;  %v116_v32 = vld [vmem:[#allocation5 + $0x58] sm:$0xff] }
  0x51   :  { %1799 = vmatpush3.bf16.msra.mxu0 %v1796_v8  ;;  %v1840_v30 = vpack.c.bf16 %v233_v28, %v232_v27  ;;  %v234_v33 = vld [vmem:[#allocation5 + $0x150] sm:$0xff]  ;;  %v235_v34 = vld [vmem:[#allocation5 + $0x158] sm:$0xff]  ;;  %v1812_v35 = vpack.c.bf16 %v116_v32, %v115_v31  ;;  %v117_v37 = vld [vmem:[#allocation5 + $0x60] sm:$0xff] }
  0x52   :  { %1831 = vmatpush3.bf16.msra.mxu1 %v1828_v12  ;;  %1801 = vmatprep.subr.bf16.mxu0 %v1800_v16  ;;  %v1844_v36 = vpack.c.bf16 %v235_v34, %v234_v33  ;;  %v118_v38 = vld [vmem:[#allocation5 + $0x68] sm:$0xff]  ;;  %v236_v39 = vld [vmem:[#allocation5 + $0x160] sm:$0xff]  ;;  %v119_v43 = vld [vmem:[#allocation5 + $0x70] sm:$0xff] }
  0x53   :  { %1833 = vmatprep.subr.bf16.mxu1 %v1832_v17  ;;  %v237_v40 = vld [vmem:[#allocation5 + $0x168] sm:$0xff]  ;;  %v1816_v41 = vpack.c.bf16 %v118_v38, %v117_v37  ;;  %v120_v44 = vld [vmem:[#allocation5 + $0x78] sm:$0xff]  ;;  %v238_v45 = vld [vmem:[#allocation5 + $0x170] sm:$0xff]  ;;  %v2221_v37 = vmov 0.0  }
  0x54   :  { %v1848_v42 = vpack.c.bf16 %v237_v40, %v236_v39  ;;  %v239_v46 = vld [vmem:[#allocation5 + $0x178] sm:$0xff]  ;;  %v1820_v47 = vpack.c.bf16 %v120_v44, %v119_v43  ;;  %v207_v49 = vld [vmem:[#allocation5 + $0x80] sm:$0xff]  ;;  %v208_v50 = vld [vmem:[#allocation5 + $0x88] sm:$0xff] }
  0x55   :  { %1803 = vmatpush3.bf16.msra.mxu0 %v1800_v16  ;;  %v1852_v48 = vpack.c.bf16 %v239_v46, %v238_v45  ;;  %v1856_v51 = vpack.c.bf16 %v208_v50, %v207_v49  ;;  %v209_v52 = vld [vmem:[#allocation5 + $0x90] sm:$0xff]  ;;  %v210_v53 = vld [vmem:[#allocation5 + $0x98] sm:$0xff]  ;;  %v2346_v54 = vld [vmem:[#allocation2 + $0x8] sm:$0xff] }
  0x56   :  { %1835 = vmatpush3.bf16.msra.mxu1 %v1832_v17  ;;  %1805 = vmatprep.subr.bf16.mxu0 %v1804_v22  ;;  %v1860_v55 = vpack.c.bf16 %v210_v53, %v209_v52  ;;  %v211_v56 = vld [vmem:[#allocation5 + $0xa0] sm:$0xff]  ;;  %v212_v57 = vld [vmem:[#allocation5 + $0xa8] sm:$0xff]  ;;  %v2348_v58 = vld [vmem:[#allocation2 + $0x10] sm:$0xff] }
  0x57   :  { %1837 = vmatprep.subr.bf16.mxu1 %v1836_v23  ;;  %v2352_v59 = vld [vmem:[#allocation2 + $0x18] sm:$0xff]  ;;  %v1864_v60 = vpack.c.bf16 %v212_v57, %v211_v56  ;;  %v213_v61 = vld [vmem:[#allocation5 + $0xb0] sm:$0xff]  ;;  %v215_v0 = vld [vmem:[#allocation5 + $0xc0] sm:$0xff] }
  0x58   :  { %v214_v62 = vld [vmem:[#allocation5 + $0xb8] sm:$0xff]  ;;  %v216_v1 = vld [vmem:[#allocation5 + $0xc8] sm:$0xff]  ;;  %v217_v3 = vld [vmem:[#allocation5 + $0xd0] sm:$0xff] }
  0x59   :  { %1807 = vmatpush3.bf16.msra.mxu0 %v1804_v22  ;;  %v1868_v63 = vpack.c.bf16 %v214_v62, %v213_v61  ;;  %v1872_v2 = vpack.c.bf16 %v216_v1, %v215_v0  ;;  %v218_v4 = vld [vmem:[#allocation5 + $0xd8] sm:$0xff]  ;;  %v219_v6 = vld [vmem:[#allocation5 + $0xe0] sm:$0xff]  ;;  %v220_v7 = vld [vmem:[#allocation5 + $0xe8] sm:$0xff] }
  0x5a   :  { %1839 = vmatpush3.bf16.msra.mxu1 %v1836_v23  ;;  %1809 = vmatprep.subr.bf16.mxu0 %v1808_v29  ;;  %v1876_v5 = vpack.c.bf16 %v218_v4, %v217_v3  ;;  %v1880_v8 = vpack.c.bf16 %v220_v7, %v219_v6  ;;  %v221_v9 = vld [vmem:[#allocation5 + $0xf0] sm:$0xff]  ;;  %v222_v10 = vld [vmem:[#allocation5 + $0xf8] sm:$0xff]  ;;  %v89_v12 = vld [vmem:[#allocation8] sm:$0xff] }
  0x5b   :  { %1841 = vmatprep.subr.bf16.mxu1 %v1840_v30  ;;  %v1884_v11 = vpack.c.bf16 %v222_v10, %v221_v9  ;;  %v90_v13 = vld [vmem:[#allocation8 + $0x8] sm:$0xff]  ;;  %v91_v16 = vld [vmem:[#allocation8 + $0x10] sm:$0xff]  ;;  %v92_v17 = vld [vmem:[#allocation8 + $0x18] sm:$0xff] }
  0x5c   :  { %v2363_v15 = vpack.c.bf16 %v90_v13, %v89_v12  ;;  %v2370_v18 = vpack.c.bf16 %v92_v17, %v91_v16  ;;  %v93_v19 = vld [vmem:[#allocation8 + $0x20] sm:$0xff]  ;;  %v94_v20 = vld [vmem:[#allocation8 + $0x28] sm:$0xff]  ;;  %v95_v22 = vld [vmem:[#allocation8 + $0x30] sm:$0xff] }
  0x5d   :  { %1811 = vmatpush3.bf16.msra.mxu0 %v1808_v29  ;;  %v2376_v21 = vpack.c.bf16 %v94_v20, %v93_v19  ;;  %v96_v23 = vld [vmem:[#allocation8 + $0x38] sm:$0xff]  ;;  %v97_v25 = vld [vmem:[#allocation8 + $0x40] sm:$0xff]  ;;  %v99_v28 = vld [vmem:[#allocation8 + $0x50] sm:$0xff] }
  0x5e   :  { %1843 = vmatpush3.bf16.msra.mxu1 %v1840_v30  ;;  %1813 = vmatprep.subr.bf16.mxu0 %v1812_v35  ;;  %v2382_v24 = vpack.c.bf16 %v96_v23, %v95_v22  ;;  %v100_v29 = vld [vmem:[#allocation8 + $0x58] sm:$0xff]  ;;  %v101_v31 = vld [vmem:[#allocation8 + $0x60] sm:$0xff]  ;;  %v102_v32 = vld [vmem:[#allocation8 + $0x68] sm:$0xff] }
  0x5f   :  { %1845 = vmatprep.subr.bf16.mxu1 %v1844_v36  ;;  %v2394_v30 = vpack.c.bf16 %v100_v29, %v99_v28  ;;  %v2400_v33 = vpack.c.bf16 %v102_v32, %v101_v31  ;;  %v103_v34 = vld [vmem:[#allocation8 + $0x70] sm:$0xff]  ;;  %v657_v28 = vld [vmem:[#allocation7] sm:$0xff]  ;;  %v658_v29 = vld [vmem:[#allocation7 + $0x8] sm:$0xff] }
  0x60   :  { %v776_v31 = vld [vmem:[#allocation7 + $0x100] sm:$0xff]  ;;  %v1936_v32 = vpack.c.bf16 %v658_v29, %v657_v28  ;;  %v785_v29 = vld [vmem:[#allocation7 + $0x148] sm:$0xff] }
  0x61   :  { %1815 = vmatpush3.bf16.msra.mxu0 %v1812_v35  ;;  %v104_v35 = vld [vmem:[#allocation8 + $0x78] sm:$0xff]  ;;  %v784_v28 = vld [vmem:[#allocation7 + $0x140] sm:$0xff] }
  0x62   :  { %1847 = vmatpush3.bf16.msra.mxu1 %v1844_v36  ;;  %1817 = vmatprep.subr.bf16.mxu0 %v1816_v41  ;;  %v2406_v36 = vpack.c.bf16 %v104_v35, %v103_v34  ;;  %v777_v34 = vld [vmem:[#allocation7 + $0x108] sm:$0xff]  ;;  %v659_v35 = vld [vmem:[#allocation7 + $0x10] sm:$0xff] }
  0x63   :  { %1849 = vmatprep.subr.bf16.mxu1 %v1848_v42 }
  0x65   :  { %1819 = vmatpush3.bf16.msra.mxu0 %v1816_v41 }
  0x66   :  { %1851 = vmatpush3.bf16.msra.mxu1 %v1848_v42  ;;  %1821 = vmatprep.subr.bf16.mxu0 %v1820_v47 }
  0x67   :  { %1853 = vmatprep.subr.bf16.mxu1 %v1852_v48 }
  0x69   :  { %1823 = vmatpush3.bf16.msra.mxu0 %v1820_v47 }
  0x6a   :  { %1855 = vmatpush3.bf16.msra.mxu1 %v1852_v48  ;;  %1857 = vmatprep.subr.bf16.mxu0 %v1856_v51 }
  0x6b   :  { %1888 = vmatprep.subr.bf16.mxu1 %v2219_v14 }
  0x6c   :  { %1457 = vmatmul.mubr.f32.vlgmr.msra.gmra.mrb[0].mxu0 %v2346_v54 }
  0x6d   :  { %1495 = vmatmul.mubr.f32.vlgmr.msra.gmra.mrb[0].mxu1 %v2346_v54  ;;  %1859 = vmatpush3.bf16.msra.mxu0 %v1856_v51 }
  0x6e   :  { %1861 = vmatprep.subr.bf16.mxu0 %v1860_v55  ;;  %1459 = vmatprep.mubr.f32.mxu0 %v2348_v58 }
  0x6f   :  { %1497 = vmatprep.mubr.f32.mxu1 %v2348_v58  ;;  %1890 = vmatpush3.bf16.msra.mxu1 %v2363_v15 }
  0x70   :  { %1460 = vmatmul.mubr.f32.gmra.mrb[2].mxu0 %v2352_v59  ;;  %1891 = vmatprep.subr.bf16.mxu1 %v2219_v14 }
  0x71   :  { %1863 = vmatpush3.bf16.msra.mxu0 %v1860_v55  ;;  %1498 = vmatmul.mubr.f32.gmra.mrb[2].mxu1 %v2352_v59 }
  0x72   :  { %1865 = vmatprep.subr.bf16.mxu0 %v1864_v60  ;;  %1532 = vmatprep.mubr.f32.mxu0 %v2342_v26  ;;  %v98_v26 = vld [vmem:[#allocation8 + $0x48] sm:$0xff] }
  0x73   :  { %1893 = vmatpush3.bf16.msra.mxu1 %v2370_v18  ;;  %v2388_v27 = vpack.c.bf16 %v98_v26, %v97_v25  ;;  %1570 = vmatprep.mubr.msk.f32.mxu1 %vm2220_vm0, %v2221_v37 }
  0x74   :  { %1894 = vmatprep.subr.bf16.mxu1 %v2219_v14 }
  0x75   :  { %1867 = vmatpush3.bf16.msra.mxu0 %v1864_v60 }
  0x76   :  { %1869 = vmatprep.subr.bf16.mxu0 %v1868_v63 }
  0x77   :  { %1896 = vmatpush3.bf16.msra.mxu1 %v2376_v21 }
  0x78   :  { %1897 = vmatprep.subr.bf16.mxu1 %v2219_v14 }
  0x79   :  { %1871 = vmatpush3.bf16.msra.mxu0 %v1868_v63 }
  0x7a   :  { %1873 = vmatprep.subr.bf16.mxu0 %v1872_v2 }
  0x7b   :  { %1899 = vmatpush3.bf16.msra.mxu1 %v2382_v24 }
  0x7c   :  { %1900 = vmatprep.subr.bf16.mxu1 %v2219_v14 }
  0x7d   :  { %1875 = vmatpush3.bf16.msra.mxu0 %v1872_v2 }
  0x7e   :  { %1877 = vmatprep.subr.bf16.mxu0 %v1876_v5 }
  0x7f   :  { %1902 = vmatpush3.bf16.msra.mxu1 %v2388_v27 }
  0x80   :  { %1903 = vmatprep.subr.bf16.mxu1 %v2219_v14 }
  0x81   :  { %1879 = vmatpush3.bf16.msra.mxu0 %v1876_v5 }
  0x82   :  { %1881 = vmatprep.subr.bf16.mxu0 %v1880_v8 }
  0x83   :  { %1905 = vmatpush3.bf16.msra.mxu1 %v2394_v30 }
  0x84   :  { %1906 = vmatprep.subr.bf16.mxu1 %v2219_v14 }
  0x85   :  { %1883 = vmatpush3.bf16.msra.mxu0 %v1880_v8 }
  0x86   :  { %1885 = vmatprep.subr.bf16.mxu0 %v1884_v11 }
  0x87   :  { %1908 = vmatpush3.bf16.msra.mxu1 %v2400_v33 }
  0x88   :  { %1909 = vmatprep.subr.bf16.mxu1 %v2219_v14 }
  0x89   :  { %1887 = vmatpush3.bf16.msra.mxu0 %v1884_v11 }
  0x8a   :  { %1912 = vmatprep.subr.bf16.mxu0 %v2219_v14 }
  0x8b   :  { %1911 = vmatpush3.bf16.msra.mxu1 %v2406_v36 }
  0x8c   :  { %1533 = vmatmul.mubr.f32.vlgmr.msra.gmra.mrb[4].mxu0 %v2346_v54  ;;  %1937 = vmatprep.subr.bf16.mxu1 %v1936_v32 }
  0x8d   :  { %1535 = vmatprep.mubr.f32.mxu0 %v2348_v58  ;;  %1914 = vmatpush3.bf16.msra.mxu0 %v2363_v15 }
  0x8e   :  { %1915 = vmatprep.subr.bf16.mxu0 %v2219_v14 }
  0x90   :  { %1536 = vmatmul.mubr.f32.gmra.mrb[6].mxu0 %v2352_v59 }
  0x91   :  { %1917 = vmatpush3.bf16.msra.mxu0 %v2370_v18  ;;  %1605 = vmatprep.mubr.msk.f32.mxu0 %vm2220_vm0, %v2221_v37 }
  0x92   :  { %1918 = vmatprep.subr.bf16.mxu0 %v2219_v14 }
  0x95   :  { %1920 = vmatpush3.bf16.msra.mxu0 %v2376_v21 }
  0x96   :  { %1921 = vmatprep.subr.bf16.mxu0 %v2219_v14 }
  0x99   :  { %1923 = vmatpush3.bf16.msra.mxu0 %v2382_v24 }
  0x9a   :  { %1924 = vmatprep.subr.bf16.mxu0 %v2219_v14 }
  0x9d   :  { %1926 = vmatpush3.bf16.msra.mxu0 %v2388_v27 }
  0x9e   :  { %1927 = vmatprep.subr.bf16.mxu0 %v2219_v14 }
  0xa1   :  { %1929 = vmatpush3.bf16.msra.mxu0 %v2394_v30 }
  0xa2   :  { %1930 = vmatprep.subr.bf16.mxu0 %v2219_v14 }
  0xa5   :  { %1932 = vmatpush3.bf16.msra.mxu0 %v2400_v33 }
  0xa6   :  { %1933 = vmatprep.subr.bf16.mxu0 %v2219_v14 }
  0xa9   :  { %1935 = vmatpush3.bf16.msra.mxu0 %v2406_v36 }
 0x13f   :  { %v1458_v38 = vpop.f32.mrb[0].mxu0 }
 0x140   :  { %v331_v39 = vrot.slane %v1458_v38, 7  ;;  %v1496_v40 = vpop.f32.mrb[0].mxu1  ;;  %v187_v41 = vpop.f32.mrb[1].mxu0  ;;  %v660_v38 = vld [vmem:[#allocation7 + $0x18] sm:$0xff] }
 0x141   :  { %v348_v42 = vrot.slane %v1496_v40, 1  ;;  %v330_v43 = vrot.slane %v187_v41, 7  ;;  %v306_v44 = vpop.f32.mrb[1].mxu1  ;;  %v1940_v40 = vpack.c.bf16 %v660_v38, %v659_v35  ;;  %v530_v41 = vlaneseq  ;;  %v786_v38 = vld [vmem:[#allocation7 + $0x150] sm:$0xff] }
 0x142   :  { %v347_v45 = vrot.slane %v306_v44, 1 }
 0x143   :  { %v357_v46 = vsel %vm346_vm1, %v348_v42, 0.0  ;;  %v340_v47 = vsel %vm329_vm2, 0.0, %v330_v43  ;;  %v1461_v48 = vpop.f32.mrb[2].mxu0  ;;  %v332_v49 = vsel %vm329_vm2, %v330_v43, %v331_v39  ;;  %v1968_v39 = vpack.c.bf16 %v777_v34, %v776_v31  ;;  %v668_v34 = vld [vmem:[#allocation7 + $0x58] sm:$0xff] }
 0x144   :  { %v334_v50 = vrot.slane %v1461_v48, 7  ;;  %v1499_v51 = vpop.f32.mrb[2].mxu1  ;;  %v197_v52 = vpop.f32.mrb[3].mxu0  ;;  %v360_v53 = vadd.f32 %v357_v46, %v332_v49  ;;  %v349_v55 = vsel %vm346_vm1, %v347_v45, %v348_v42  ;;  %v531_v42 = vshrl.u32 %v530_v41, 7  ;;  %v669_v41 = vld [vmem:[#allocation7 + $0x60] sm:$0xff] }
 0x145   :  { %v351_v56 = vrot.slane %v1499_v51, 1  ;;  %v333_v57 = vrot.slane %v197_v52, 7  ;;  %v316_v60 = vpop.f32.mrb[3].mxu1  ;;  %v359_v61 = vadd.f32 %v349_v55, %v340_v47  ;;  %1969 = vmatprep.subr.bf16.mxu0 %v1968_v39  ;;  %v1984_v31 = vpack.c.bf16 %v785_v29, %v784_v28  ;;  %v764_v29 = vld [vmem:[#allocation7 + $0xa8] sm:$0xff] }
 0x146   :  { %v350_v62 = vrot.slane %v316_v60, 1  ;;  %v2422_v43 = vsub.s32 0, %v531_v42  ;;  %v670_v42 = vld [vmem:[#allocation7 + $0x68] sm:$0xff] }
 0x147   :  { %v358_v63 = vsel %vm346_vm1, %v351_v56, 0.0  ;;  %v341_v0 = vsel %vm329_vm2, 0.0, %v333_v57  ;;  %v335_v1 = vsel %vm329_vm2, %v333_v57, %v334_v50 }
 0x148   :  { %v362_v2 = vadd.f32 %v358_v63, %v335_v1  ;;  %v352_v3 = vsel %vm346_vm1, %v350_v62, %v351_v56 }
 0x149   :  { %v361_v4 = vadd.f32 %v352_v3, %v341_v0 }
 0x15f   :  { %v1534_v5 = vpop.f32.mrb[4].mxu0 }
 0x160   :  { %v435_v6 = vadd.f32 %v1534_v5, %v360_v53  ;;  %v429_v7 = vpop.f32.mrb[5].mxu0  ;;  %v779_v5 = vld [vmem:[#allocation7 + $0x118] sm:$0xff] }
 0x161   :  { %v430_v8 = vadd.f32 %v429_v7, %v359_v61  ;;  %v661_v7 = vld [vmem:[#allocation7 + $0x20] sm:$0xff] }
 0x163   :  { %v1537_v9 = vpop.f32.mrb[6].mxu0  ;;  %v450_v12 = vadd.f32 %v435_v6, %v430_v8 }
 0x164   :  { %v445_v10 = vadd.f32 %v1537_v9, %v362_v2  ;;  %v439_v11 = vpop.f32.mrb[7].mxu0 }
 0x165   :  { %v440_v13 = vadd.f32 %v439_v11, %v361_v4  ;;  %v778_v4 = vld [vmem:[#allocation7 + $0x110] sm:$0xff]  ;;  %v781_v11 = vld [vmem:[#allocation7 + $0x128] sm:$0xff] }
 0x167   :  { %v451_v16 = vadd.f32 %v450_v12, %v440_v13 }
 0x169   :  { %v452_v17 = vadd.f32 %v451_v16, %v445_v10  ;;  %v664_v16 = vld [vmem:[#allocation7 + $0x38] sm:$0xff] }
 0x16b   :  { %v453_v19 = vrot.slane %v452_v17, 4 }
 0x16d   :  { %v454_v20 = vadd.f32 %v453_v19, %v452_v17  ;;  %v782_v19 = vld [vmem:[#allocation7 + $0x130] sm:$0xff] }
 0x16f   :  { %v455_v22 = vrot.slane %v454_v20, 2 }
 0x171   :  { %v456_v23 = vadd.f32 %v455_v22, %v454_v20  ;;  %v783_v20 = vld [vmem:[#allocation7 + $0x138] sm:$0xff] }
 0x172   :  { %v1980_v22 = vpack.c.bf16 %v783_v20, %v782_v19  ;;  %v761_v19 = vld [vmem:[#allocation7 + $0x90] sm:$0xff]  ;;  %v762_v20 = vld [vmem:[#allocation7 + $0x98] sm:$0xff] }
 0x173   :  { %v457_v25 = vrot.slane %v456_v23, 1 }
 0x175   :  { %v458_v26 = vadd.f32 %v457_v25, %v456_v23  ;;  %v665_v23 = vld [vmem:[#allocation7 + $0x40] sm:$0xff]  ;;  %v666_v25 = vld [vmem:[#allocation7 + $0x48] sm:$0xff] }
 0x177   :  { %1571 = vmatmul.mubr.f32.vlgmr.msra.gmra.mrb[4].mxu1 %v458_v26  ;;  %v1952_v26 = vpack.c.bf16 %v666_v25, %v665_v23 }
 0x178   :  { %1939 = vmatpush3.bf16.msra.mxu1 %v1936_v32  ;;  %v667_v32 = vld [vmem:[#allocation7 + $0x50] sm:$0xff] }
 0x179   :  { %1941 = vmatprep.subr.bf16.mxu1 %v1940_v40  ;;  %v1956_v35 = vpack.c.bf16 %v668_v34, %v667_v32 }
 0x17c   :  { %1943 = vmatpush3.bf16.msra.mxu1 %v1940_v40 }
 0x24a   :  { %v525_v44 = vpop.f32.mrb[4].mxu1 }
 0x24b   :  { %v529_v45 = vmul.f32 0.001953125, %v525_v44  ;;  %v1572_v46 = vpop.f32.mrb[5].mxu1  ;;  %v1960_v44 = vpack.c.bf16 %v670_v42, %v669_v41  ;;  %v768_v41 = vld [vmem:[#allocation7 + $0xc8] sm:$0xff] }
 0x24c   :  { %v789_v46 = vld [vmem:[#allocation7 + $0x168] sm:$0xff] }
 0x24d   :  { %v533_v47 = vrot.slane %v529_v45, %v2422_v43  ;;  %v788_v45 = vld [vmem:[#allocation7 + $0x160] sm:$0xff] }
 0x24f   :  { %v2425_v48 = vsub.f32 %v430_v8, %v533_v47  ;;  %v2427_v49 = vsub.f32 %v435_v6, %v533_v47  ;;  %v2429_v50 = vsub.f32 %v440_v13, %v533_v47  ;;  %v2431_v51 = vsub.f32 %v445_v10, %v533_v47  ;;  %v662_v8 = vld [vmem:[#allocation7 + $0x28] sm:$0xff]  ;;  %v780_v10 = vld [vmem:[#allocation7 + $0x120] sm:$0xff]  ;;  %v663_v13 = vld [vmem:[#allocation7 + $0x30] sm:$0xff] }
 0x250   :  { %v1972_v6 = vpack.c.bf16 %v779_v5, %v778_v4  ;;  %v1944_v9 = vpack.c.bf16 %v662_v8, %v661_v7  ;;  %v1976_v12 = vpack.c.bf16 %v781_v11, %v780_v10  ;;  %v1948_v17 = vpack.c.bf16 %v664_v16, %v663_v13  ;;  %v671_v47 = vld [vmem:[#allocation7 + $0x70] sm:$0xff]  ;;  %v448_v4 = vld [vmem:[%s2530_s3] sm:$0x1] }
 0x251   :  { %v538_v52 = vmul.f32 %v2425_v48, %v2425_v48  ;;  %v539_v53 = vmul.f32 %v2427_v49, %v2427_v49  ;;  %v540_v55 = vmul.f32 %v2429_v50, %v2429_v50  ;;  %v541_v57 = vmul.f32 %v2431_v51, %v2431_v51  ;;  %v1234_v8 = vld [vmem:[%s2531_s4] ss:$0 sm:$0xff] }
 0x252   :  { %1945 = vmatprep.subr.bf16.mxu1 %v1944_v9 }
 0x253   :  { %v542_v56 = vadd.f32 %v539_v53, %v538_v52  ;;  %1947 = vmatpush3.bf16.msra.mxu1 %v1944_v9  ;;  %v1992_v52 = vpack.c.bf16 %v789_v46, %v788_v45  ;;  %v672_v53 = vld [vmem:[#allocation7 + $0x78] sm:$0xff] }
 0x254   :  { %1949 = vmatprep.subr.bf16.mxu1 %v1948_v17  ;;  %v770_v45 = vld [vmem:[#allocation7 + $0xd8] sm:$0xff] }
 0x255   :  { %v543_v60 = vadd.f32 %v542_v56, %v540_v55  ;;  %v790_v55 = vld [vmem:[#allocation7 + $0x170] sm:$0xff]  ;;  %v791_v56 = vld [vmem:[#allocation7 + $0x178] sm:$0xff] }
 0x257   :  { %v544_v61 = vadd.f32 %v543_v60, %v541_v57  ;;  %1951 = vmatpush3.bf16.msra.mxu1 %v1948_v17  ;;  %v1964_v57 = vpack.c.bf16 %v672_v53, %v671_v47  ;;  %v1996_v60 = vpack.c.bf16 %v791_v56, %v790_v55  ;;  %v771_v47 = vld [vmem:[#allocation7 + $0xe0] sm:$0xff]  ;;  %v773_v55 = vld [vmem:[#allocation7 + $0xf0] sm:$0xff]  ;;  %v774_v56 = vld [vmem:[#allocation7 + $0xf8] sm:$0xff] }
 0x258   :  { %1953 = vmatprep.subr.bf16.mxu1 %v1952_v26 }
 0x259   :  { %v545_v62 = vrot.slane %v544_v61, 4 }
 0x25b   :  { %v546_v63 = vadd.f32 %v545_v62, %v544_v61  ;;  %1955 = vmatpush3.bf16.msra.mxu1 %v1952_v26  ;;  %v759_v61 = vld [vmem:[#allocation7 + $0x80] sm:$0xff]  ;;  %v760_v62 = vld [vmem:[#allocation7 + $0x88] sm:$0xff] }
 0x25c   :  { %1957 = vmatprep.subr.bf16.mxu1 %v1956_v35 }
 0x25d   :  { %v547_v0 = vrot.slane %v546_v63, 2 }
 0x25f   :  { %v548_v1 = vadd.f32 %v547_v0, %v546_v63  ;;  %1959 = vmatpush3.bf16.msra.mxu1 %v1956_v35  ;;  %v2000_v63 = vpack.c.bf16 %v760_v62, %v759_v61  ;;  %v765_v35 = vld [vmem:[#allocation7 + $0xb0] sm:$0xff] }
 0x260   :  { %1961 = vmatprep.subr.bf16.mxu1 %v1960_v44 }
 0x261   :  { %v549_v2 = vrot.slane %v548_v1, 1 }
 0x263   :  { %v550_v3 = vadd.f32 %v549_v2, %v548_v1  ;;  %1963 = vmatpush3.bf16.msra.mxu1 %v1960_v44  ;;  %v769_v44 = vld [vmem:[#allocation7 + $0xd0] sm:$0xff] }
 0x264   :  { %1965 = vmatprep.subr.bf16.mxu1 %v1964_v57  ;;  %v2020_v46 = vpack.c.bf16 %v770_v45, %v769_v44 }
 0x265   :  { %1606 = vmatmul.mubr.f32.vlgmr.msra.gmra.mrb[8].mxu0 %v550_v3 }
 0x266   :  { %1971 = vmatpush3.bf16.msra.mxu0 %v1968_v39  ;;  %v787_v39 = vld [vmem:[#allocation7 + $0x158] sm:$0xff] }
 0x267   :  { %1973 = vmatprep.subr.bf16.mxu0 %v1972_v6  ;;  %v1988_v40 = vpack.c.bf16 %v787_v39, %v786_v38  ;;  %1967 = vmatpush3.bf16.msra.mxu1 %v1964_v57  ;;  %v766_v38 = vld [vmem:[#allocation7 + $0xb8] sm:$0xff]  ;;  %v2028_v57 = vpack.c.bf16 %v774_v56, %v773_v55 }
 0x268   :  { %2001 = vmatprep.subr.bf16.mxu1 %v2000_v63  ;;  %v2012_v39 = vpack.c.bf16 %v766_v38, %v765_v35 }
 0x26a   :  { %1975 = vmatpush3.bf16.msra.mxu0 %v1972_v6 }
 0x26b   :  { %1977 = vmatprep.subr.bf16.mxu0 %v1976_v12 }
 0x26e   :  { %1979 = vmatpush3.bf16.msra.mxu0 %v1976_v12 }
 0x26f   :  { %1981 = vmatprep.subr.bf16.mxu0 %v1980_v22 }
 0x272   :  { %1983 = vmatpush3.bf16.msra.mxu0 %v1980_v22 }
 0x273   :  { %1985 = vmatprep.subr.bf16.mxu0 %v1984_v31 }
 0x276   :  { %1987 = vmatpush3.bf16.msra.mxu0 %v1984_v31 }
 0x277   :  { %1989 = vmatprep.subr.bf16.mxu0 %v1988_v40 }
 0x27a   :  { %1991 = vmatpush3.bf16.msra.mxu0 %v1988_v40  ;;  %v767_v40 = vld [vmem:[#allocation7 + $0xc0] sm:$0xff] }
 0x27b   :  { %1993 = vmatprep.subr.bf16.mxu0 %v1992_v52  ;;  %v2016_v42 = vpack.c.bf16 %v768_v41, %v767_v40 }
 0x27e   :  { %1995 = vmatpush3.bf16.msra.mxu0 %v1992_v52  ;;  %v772_v52 = vld [vmem:[#allocation7 + $0xe8] sm:$0xff] }
 0x27f   :  { %1997 = vmatprep.subr.bf16.mxu0 %v1996_v60  ;;  %v2024_v53 = vpack.c.bf16 %v772_v52, %v771_v47 }
 0x282   :  { %1999 = vmatpush3.bf16.msra.mxu0 %v1996_v60 }
 0x283   :  { %2032 = vmatprep.subr.bf16.mxu0 %v2219_v14 }
 0x338   :  { %v617_v0 = vpop.f32.mrb[8].mxu0 }
 0x339   :  { %v621_v1 = vmul.f32 0.001953125, %v617_v0  ;;  %v1607_v2 = vpop.f32.mrb[9].mxu0 }
 0x33b   :  { %v622_v3 = vadd.f32 1e-05, %v621_v1 }
 0x33d   :  { %2090 = vrsqrt.f32 %v622_v3 }
 0x347   :  { %v2091_v5 = vpop.eup %2090 }
 0x348   :  { %v624_v6 = vmul.f32 %v2091_v5, %v448_v4 }
 0x34a   :  { %v629_v7 = vrot.slane %v624_v6, %v2422_v43 }
 0x34c   :  { %v631_v9 = vmul.f32 %v629_v7, %v2425_v48  ;;  %v632_v10 = vmul.f32 %v629_v7, %v2427_v49  ;;  %v633_v11 = vmul.f32 %v629_v7, %v2429_v50  ;;  %v634_v12 = vmul.f32 %v629_v7, %v2431_v51  ;;  %v763_v51 = vld [vmem:[#allocation7 + $0xa0] sm:$0xff] }
 0x34d   :  { %v2004_v49 = vpack.c.bf16 %v762_v20, %v761_v19  ;;  %v2008_v32 = vpack.c.bf16 %v764_v29, %v763_v51 }
 0x34e   :  { %v641_v13 = vadd.f32 %v1234_v8, %v631_v9  ;;  %v642_v16 = vadd.f32 %v1234_v8, %v632_v10  ;;  %v643_v17 = vadd.f32 %v1234_v8, %v633_v11  ;;  %v644_v22 = vadd.f32 %v1234_v8, %v634_v12 }
 0x350   :  { %vm645_vm3 = vcmp.ge.f32.partialorder %v641_v13, 0.0  ;;  %v649_v23 = vmul.f32 0.1, %v641_v13  ;;  %vm646_vm4 = vcmp.ge.f32.partialorder %v642_v16, 0.0  ;;  %v650_v25 = vmul.f32 0.1, %v642_v16 }
 0x351   :  { %vm647_vm5 = vcmp.ge.f32.partialorder %v643_v17, 0.0  ;;  %v651_v26 = vmul.f32 0.1, %v643_v17  ;;  %v652_v50 = vmul.f32 0.1, %v644_v22  ;;  %vm648_vm6 = vcmp.ge.f32.partialorder %v644_v22, 0.0 }
 0x352   :  { %v653_v28 = vsel %vm645_vm3, %v641_v13, %v649_v23  ;;  %v2453_v48 = vsel %vm646_vm4, %v642_v16, %v650_v25 }
 0x353   :  { %1640 = vmatprep.mubr.f32.mxu1 %v653_v28  ;;  %1678 = vmatprep.mubr.f32.mxu0 %v653_v28  ;;  %v655_v31 = vsel %vm647_vm5, %v643_v17, %v651_v26  ;;  %v656_v34 = vsel %vm648_vm6, %v644_v22, %v652_v50 }
 0x354   :  { %1641 = vmatmul.mubr.f32.vlgmr.msra.gmra.mrb[6].mxu1 %v2453_v48  ;;  %1679 = vmatmul.mubr.f32.vlgmr.msra.gmra.mrb[10].mxu0 %v2453_v48 }
 0x355   :  { %2003 = vmatpush3.bf16.msra.mxu1 %v2000_v63  ;;  %1643 = vmatprep.mubr.f32.mxu1 %v655_v31 }
 0x356   :  { %1681 = vmatprep.mubr.f32.mxu0 %v655_v31  ;;  %2005 = vmatprep.subr.bf16.mxu1 %v2004_v49 }
 0x357   :  { %2034 = vmatpush3.bf16.msra.mxu0 %v2363_v15 }
 0x358   :  { %1644 = vmatmul.mubr.f32.gmra.mrb[8].mxu1 %v656_v34  ;;  %1682 = vmatmul.mubr.f32.gmra.mrb[12].mxu0 %v656_v34 }
 0x359   :  { %2007 = vmatpush3.bf16.msra.mxu1 %v2004_v49  ;;  %1716 = vmatprep.mubr.f32.mxu1 %v653_v28 }
 0x35a   :  { %2009 = vmatprep.subr.bf16.mxu1 %v2008_v32  ;;  %2035 = vmatprep.subr.bf16.mxu0 %v2219_v14 }
 0x35b   :  { %2037 = vmatpush3.bf16.msra.mxu0 %v2370_v18  ;;  %1754 = vmatprep.mubr.msk.f32.mxu0 %vm2220_vm0, %v2221_v37 }
 0x35c   :  { %2038 = vmatprep.subr.bf16.mxu0 %v2219_v14 }
 0x35d   :  { %2011 = vmatpush3.bf16.msra.mxu1 %v2008_v32 }
 0x35e   :  { %2013 = vmatprep.subr.bf16.mxu1 %v2012_v39 }
 0x35f   :  { %2040 = vmatpush3.bf16.msra.mxu0 %v2376_v21 }
 0x360   :  { %2041 = vmatprep.subr.bf16.mxu0 %v2219_v14 }
 0x361   :  { %2015 = vmatpush3.bf16.msra.mxu1 %v2012_v39 }
 0x362   :  { %2017 = vmatprep.subr.bf16.mxu1 %v2016_v42 }
 0x363   :  { %2043 = vmatpush3.bf16.msra.mxu0 %v2382_v24 }
 0x364   :  { %2044 = vmatprep.subr.bf16.mxu0 %v2219_v14 }
 0x365   :  { %2019 = vmatpush3.bf16.msra.mxu1 %v2016_v42 }
 0x366   :  { %2021 = vmatprep.subr.bf16.mxu1 %v2020_v46 }
 0x367   :  { %2046 = vmatpush3.bf16.msra.mxu0 %v2388_v27 }
 0x368   :  { %2047 = vmatprep.subr.bf16.mxu0 %v2219_v14 }
 0x369   :  { %2023 = vmatpush3.bf16.msra.mxu1 %v2020_v46 }
 0x36a   :  { %2025 = vmatprep.subr.bf16.mxu1 %v2024_v53 }
 0x36b   :  { %2049 = vmatpush3.bf16.msra.mxu0 %v2394_v30 }
 0x36c   :  { %2050 = vmatprep.subr.bf16.mxu0 %v2219_v14 }
 0x36d   :  { %2027 = vmatpush3.bf16.msra.mxu1 %v2024_v53 }
 0x36e   :  { %2029 = vmatprep.subr.bf16.mxu1 %v2028_v57 }
 0x36f   :  { %2052 = vmatpush3.bf16.msra.mxu0 %v2400_v33 }
 0x370   :  { %2053 = vmatprep.subr.bf16.mxu0 %v2219_v14 }
 0x371   :  { %2031 = vmatpush3.bf16.msra.mxu1 %v2028_v57 }
 0x372   :  { %2056 = vmatprep.subr.bf16.mxu1 %v2219_v14 }
 0x373   :  { %2055 = vmatpush3.bf16.msra.mxu0 %v2406_v36 }
 0x374   :  { %1717 = vmatmul.mubr.f32.vlgmr.msra.gmra.mrb[10].mxu1 %v2453_v48 }
 0x375   :  { %1719 = vmatprep.mubr.f32.mxu1 %v655_v31  ;;  %2058 = vmatpush3.bf16.msra.mxu1 %v2363_v15 }
 0x376   :  { %2059 = vmatprep.subr.bf16.mxu1 %v2219_v14 }
 0x378   :  { %1720 = vmatmul.mubr.f32.gmra.mrb[12].mxu1 %v656_v34 }
 0x379   :  { %2061 = vmatpush3.bf16.msra.mxu1 %v2370_v18  ;;  %1789 = vmatprep.mubr.msk.f32.mxu1 %vm2220_vm0, %v2221_v37 }
 0x37a   :  { %2062 = vmatprep.subr.bf16.mxu1 %v2219_v14 }
 0x37d   :  { %2064 = vmatpush3.bf16.msra.mxu1 %v2376_v21 }
 0x37e   :  { %2065 = vmatprep.subr.bf16.mxu1 %v2219_v14 }
 0x381   :  { %2067 = vmatpush3.bf16.msra.mxu1 %v2382_v24 }
 0x382   :  { %2068 = vmatprep.subr.bf16.mxu1 %v2219_v14 }
 0x385   :  { %2070 = vmatpush3.bf16.msra.mxu1 %v2388_v27 }
 0x386   :  { %2071 = vmatprep.subr.bf16.mxu1 %v2219_v14 }
 0x389   :  { %2073 = vmatpush3.bf16.msra.mxu1 %v2394_v30 }
 0x38a   :  { %2074 = vmatprep.subr.bf16.mxu1 %v2219_v14 }
 0x38d   :  { %2076 = vmatpush3.bf16.msra.mxu1 %v2400_v33 }
 0x38e   :  { %2077 = vmatprep.subr.bf16.mxu1 %v2219_v14 }
 0x391   :  { %2079 = vmatpush3.bf16.msra.mxu1 %v2406_v36 }
 0x427   :  { %v1642_v15 = vpop.f32.mrb[6].mxu1  ;;  %v1680_v18 = vpop.f32.mrb[10].mxu0 }
 0x428   :  { %v882_v21 = vrot.slane %v1642_v15, 7  ;;  %v898_v24 = vrot.slane %v1680_v18, 1  ;;  %v739_v37 = vpop.f32.mrb[7].mxu1  ;;  %v858_v60 = vpop.f32.mrb[11].mxu0 }
 0x429   :  { %v881_v61 = vrot.slane %v739_v37, 7  ;;  %v897_v27 = vrot.slane %v858_v60, 1 }
 0x42a   :  { %v907_v62 = vsel %vm346_vm1, %v898_v24, 0.0 }
 0x42b   :  { %v891_v30 = vsel %vm329_vm2, 0.0, %v881_v61  ;;  %v1645_v63 = vpop.f32.mrb[8].mxu1  ;;  %v1683_v0 = vpop.f32.mrb[12].mxu0  ;;  %v883_v33 = vsel %vm329_vm2, %v881_v61, %v882_v21  ;;  %v899_v14 = vsel %vm346_vm1, %v897_v27, %v898_v24 }
 0x42c   :  { %v885_v1 = vrot.slane %v1645_v63, 7  ;;  %v901_v36 = vrot.slane %v1683_v0, 1  ;;  %v749_v2 = vpop.f32.mrb[9].mxu1  ;;  %v868_v3 = vpop.f32.mrb[13].mxu0  ;;  %v910_v4 = vadd.f32 %v907_v62, %v883_v33  ;;  %v909_v5 = vadd.f32 %v899_v14, %v891_v30  ;;  %v998_v63 = vld [vmem:[%s2532_s5] sm:$0x1] }
 0x42d   :  { %v884_v6 = vrot.slane %v749_v2, 7  ;;  %v900_v7 = vrot.slane %v868_v3, 1  ;;  %s2222_s5 = smov [#allocation10]  }
 0x42e   :  { %v908_v8 = vsel %vm346_vm1, %v901_v36, 0.0 }
 0x42f   :  { %v892_v9 = vsel %vm329_vm2, 0.0, %v884_v6  ;;  %v886_v10 = vsel %vm329_vm2, %v884_v6, %v885_v1  ;;  %v902_v11 = vsel %vm346_vm1, %v900_v7, %v901_v36  ;;  %v1235_v1 = vld [vmem:[%s2533_s6] ss:$0 sm:$0xff]  ;;  %s1220_s6 = sshll.u32 %s2222_s5, 4  ;;  %s1221_s6 = int_to_ptr.vmem [resolvable:$true] %s1220_s6 }
 0x430   :  { %v912_v12 = vadd.f32 %v908_v8, %v886_v10  ;;  %v911_v13 = vadd.f32 %v902_v11, %v892_v9  ;;  %v2094_v9 = vld [vmem:[#allocation2] sm:$0xff]  ;;  %s2183_s15 = scalar_lea.vmem %s1221_s6, 512  ;;  %p2188_p5 = scmp.lt.s32.totalorder %s1221_s6, %s1221_s6 }
 0x431   :  { %p2184_p4 = scmp.ne.s32.totalorder %s1221_s6, %s2183_s15  ;;  %p2189_p6 = scmp.lt.s32.totalorder %s2183_s15, %s2183_s15 }
 0x433   :  { %p2190_p7 = por %p2189_p6, %p2188_p5 }
 0x435   :  { %p2191_p8 = pnand %p2190_p7, %p2184_p4 }
 0x447   :  { %v1718_v16 = vpop.f32.mrb[10].mxu1 }
 0x448   :  { %v985_v17 = vadd.f32 %v1718_v16, %v910_v4  ;;  %v979_v19 = vpop.f32.mrb[11].mxu1 }
 0x449   :  { %v980_v20 = vadd.f32 %v979_v19, %v909_v5 }
 0x44b   :  { %v1721_v22 = vpop.f32.mrb[12].mxu1  ;;  %v1000_v26 = vadd.f32 %v985_v17, %v980_v20 }
 0x44c   :  { %v995_v23 = vadd.f32 %v1721_v22, %v912_v12  ;;  %v989_v25 = vpop.f32.mrb[13].mxu1 }
 0x44d   :  { %v990_v28 = vadd.f32 %v989_v25, %v911_v13 }
 0x44f   :  { %v1001_v48 = vadd.f32 %v1000_v26, %v990_v28 }
 0x451   :  { %v1002_v49 = vadd.f32 %v1001_v48, %v995_v23 }
 0x453   :  { %v1003_v50 = vrot.slane %v1002_v49, 4 }
 0x455   :  { %v1004_v51 = vadd.f32 %v1003_v50, %v1002_v49 }
 0x457   :  { %v1005_v29 = vrot.slane %v1004_v51, 2 }
 0x459   :  { %v1006_v31 = vadd.f32 %v1005_v29, %v1004_v51 }
 0x45b   :  { %v1007_v32 = vrot.slane %v1006_v31, 1 }
 0x45d   :  { %v1008_v34 = vadd.f32 %v1007_v32, %v1006_v31 }
 0x45f   :  { %1755 = vmatmul.mubr.f32.vlgmr.msra.gmra.mrb[14].mxu0 %v1008_v34 }
 0x532   :  { %v1075_v35 = vpop.f32.mrb[14].mxu0 }
 0x533   :  { %v1079_v38 = vmul.f32 0.001953125, %v1075_v35  ;;  %v1756_v39 = vpop.f32.mrb[15].mxu0 }
 0x535   :  { %v1083_v40 = vrot.slane %v1079_v38, %v2422_v43 }
 0x537   :  { %v1084_v41 = vsub.f32 %v980_v20, %v1083_v40  ;;  %v1085_v42 = vsub.f32 %v985_v17, %v1083_v40  ;;  %v1086_v44 = vsub.f32 %v990_v28, %v1083_v40  ;;  %v1087_v45 = vsub.f32 %v995_v23, %v1083_v40 }
 0x539   :  { %v1088_v46 = vmul.f32 %v1084_v41, %v1084_v41  ;;  %v1089_v47 = vmul.f32 %v1085_v42, %v1085_v42  ;;  %v1090_v52 = vmul.f32 %v1086_v44, %v1086_v44  ;;  %v1091_v55 = vmul.f32 %v1087_v45, %v1087_v45 }
 0x53b   :  { %v1092_v53 = vadd.f32 %v1089_v47, %v1088_v46 }
 0x53d   :  { %v1093_v56 = vadd.f32 %v1092_v53, %v1090_v52 }
 0x53f   :  { %v1094_v57 = vadd.f32 %v1093_v56, %v1091_v55 }
 0x541   :  { %v1095_v15 = vrot.slane %v1094_v57, 4 }
 0x543   :  { %v1096_v18 = vadd.f32 %v1095_v15, %v1094_v57 }
 0x545   :  { %v1097_v21 = vrot.slane %v1096_v18, 2 }
 0x547   :  { %v1098_v24 = vadd.f32 %v1097_v21, %v1096_v18 }
 0x549   :  { %v1099_v37 = vrot.slane %v1098_v24, 1 }
 0x54b   :  { %v1100_v60 = vadd.f32 %v1099_v37, %v1098_v24 }
 0x54d   :  { %1790 = vmatmul.mubr.f32.vlgmr.msra.gmra.mrb[14].mxu1 %v1100_v60 }
 0x620   :  { %v1167_v61 = vpop.f32.mrb[14].mxu1 }
 0x621   :  { %v1171_v27 = vmul.f32 0.001953125, %v1167_v61  ;;  %v1791_v62 = vpop.f32.mrb[15].mxu1 }
 0x623   :  { %v1172_v30 = vadd.f32 1e-05, %v1171_v27 }
 0x625   :  { %2092 = vrsqrt.f32 %v1172_v30 }
 0x62f   :  { %v2093_v0 = vpop.eup %2092 }
 0x630   :  { %v1174_v33 = vmul.f32 %v2093_v0, %v998_v63 }
 0x632   :  { %v1179_v14 = vrot.slane %v1174_v33, %v2422_v43 }
 0x634   :  { %v1181_v36 = vmul.f32 %v1179_v14, %v1084_v41  ;;  %v1182_v2 = vmul.f32 %v1179_v14, %v1085_v42  ;;  %v1183_v3 = vmul.f32 %v1179_v14, %v1086_v44  ;;  %v1184_v4 = vmul.f32 %v1179_v14, %v1087_v45 }
 0x636   :  { %v1191_v5 = vadd.f32 %v1235_v1, %v1181_v36  ;;  %v1192_v6 = vadd.f32 %v1235_v1, %v1182_v2  ;;  %v1193_v7 = vadd.f32 %v1235_v1, %v1183_v3  ;;  %v1194_v8 = vadd.f32 %v1235_v1, %v1184_v4 }
 0x638   :  { %v1195_v10 = vadd.f32 %v2094_v9, %v1191_v5  ;;  %v1196_v11 = vadd.f32 %v1192_v6, %v2346_v54  ;;  %v1197_v12 = vadd.f32 %v1193_v7, %v2348_v58  ;;  %v1198_v43 = vadd.f32 %v1194_v8, %v2352_v59 }
 0x63a   :  { %vm1199_vm7 = vcmp.ge.f32.partialorder %v1195_v10, 0.0  ;;  %vm1200_vm8 = vcmp.ge.f32.partialorder %v1196_v11, 0.0  ;;  %vm1201_vm9 = vcmp.ge.f32.partialorder %v1197_v12, 0.0  ;;  %vm1202_vm10 = vcmp.ge.f32.partialorder %v1198_v43, 0.0 }
 0x63b   :  { %v1203_v13 = vmul.f32 0.1, %v1195_v10  ;;  %v1204_v16 = vmul.f32 0.1, %v1196_v11  ;;  %v1205_v17 = vmul.f32 0.1, %v1197_v12 }
 0x63c   :  { %v1206_v19 = vmul.f32 0.1, %v1198_v43 }
 0x63d   :  { %v1207_v20 = vsel %vm1199_vm7, %v1195_v10, %v1203_v13  ;;  %v1208_v22 = vsel %vm1200_vm8, %v1196_v11, %v1204_v16  ;;  %v1209_v23 = vsel %vm1201_vm9, %v1197_v12, %v1205_v17 }
 0x63e   :  { %v1210_v25 = vsel %vm1202_vm10, %v1198_v43, %v1206_v19  ;;  %1211 = vst [vmem:[#allocation10] sm:$0xff] %v1207_v20  ;;  %1212 = vst [vmem:[#allocation10 + $0x8] sm:$0xff] %v1208_v22 }
 0x63f   :  { %1213 = vst [vmem:[#allocation10 + $0x10] sm:$0xff] %v1209_v23  ;;  %1214 = vst [vmem:[#allocation10 + $0x18] sm:$0xff] %v1210_v25 }
 0x640   :  { %2194 = shalt.err (!%p2191_p8)
}
 0x641   :  { %s2195_s20 = scalar_lea.hbm %s2535_s8, 512 }
 0x642   :  { %p2196_p9 = scmp.ne.s32.totalorder %s2535_s8, %s2195_s20  ;;  %p2199_p10 = scmp.lt.u32.totalorder %s2195_s20, %s2535_s8 }
 0x644   :  { %p2201_p11 = pnand %p2199_p10, %p2196_p9 }
 0x646   :  { %2204 = shalt.err (!%p2201_p11)
}
 0x647   :  { %1226 = dma.vmem_to_hbm [thread:$0]  %s1221_s6, 512, %s2535_s8, [#allocation4], %s2215_s17, %s2215_s17, %s2216_s18  }
 0x648   :  { %2211 = dma.done.wait [#allocation4], 512  }
 0x649   :  { %2212 = vsyncadd [#allocation4], 4294966784 }
 0x64a   :  { %1230 = vsyncpa [#allocation3], 1 }
 0x64b   :  { %1231 = vsyncpa [#allocation6], 1 }
 0x64c   :  { %1232 = vsyncpa [#allocation9], 1 }
 0x64d   :  { %1233 = vsyncpa [#allocation4], 1 }

</bundles_post_ra>
